<compile_context>
chip_gen: v6e
topology: v6e:2x2x1
jax: 0.10.0
libtpu: 0.0.40
codegen_flags: <defaults>
</compile_context>

<pallas_src>
import functools

import jax
import jax.numpy as jnp
from jax.experimental import pallas as pl
from jax.experimental.pallas import tpu as pltpu

LEN_EMB = 32
LEN_FINAL_EMB = LEN_EMB // 2
DIST_N_NBRS = 3

EPAD = 128   # padded embedding width (lane-dense)
HPAD = 128   # padded classifier hidden width


def _round_up(x, m):
    return ((x + m - 1) // m) * m


def _pad2(a, rows, cols, value=0.0):
    r, c = a.shape
    return jnp.pad(a, ((0, rows - r), (0, cols - c)), constant_values=value)


def _vmem_limit_bytes():
    """Generation-aware scoped-VMEM limit with ~30% headroom."""
    try:
        cap = int(pltpu.get_tpu_info().vmem_capacity_bytes)
    except Exception:
        cap = 64 * 1024 * 1024
    return min(max(32 * 1024 * 1024, int(cap * 0.7)), 112 * 1024 * 1024)


# --------------------------------------------------------------------------
# Kernel 1: normalisation + folded (gene-map @ embed) matmul + classifier
# --------------------------------------------------------------------------
def _embed_classify_kernel(x_ref, mean_ref, istd_ref, gfold_ref,
                           bemb_ref, W1_ref, b1_ref, W2_ref, b2_ref,
                           emb_ref, preds_ref, acc_ref, *, n_classes):
    f32 = jnp.float32
    k = pl.program_id(1)
    nk = pl.num_programs(1)

    @pl.when(k == 0)
    def _():
        acc_ref[...] = jnp.zeros_like(acc_ref)

    # (x - mean) * inv_std in f32; only MXU operands are cast to bf16.
    xn = (x_ref[...] - mean_ref[...]) * istd_ref[...]
    acc_ref[...] += jnp.dot(xn.astype(jnp.bfloat16), gfold_ref[...],
                            preferred_element_type=f32)

    @pl.when(k == nk - 1)
    def _():
        emb = jnp.maximum(acc_ref[...] + bemb_ref[...], 0.0)
        emb_ref[...] = emb

        h = jnp.maximum(
            jnp.dot(emb.astype(jnp.bfloat16), W1_ref[...],
                    preferred_element_type=f32) + b1_ref[...], 0.0)
        logits = jnp.dot(h.astype(jnp.bfloat16), W2_ref[...],
                         preferred_element_type=f32) + b2_ref[...]

        lane = jax.lax.broadcasted_iota(jnp.int32, logits.shape, 1)
        valid = lane < n_classes
        logits = jnp.where(valid, logits, -1e30)
        z = logits - jnp.max(logits, axis=1, keepdims=True)
        e = jnp.where(valid, jnp.exp(z), 0.0)
        preds_ref[...] = e / jnp.sum(e, axis=1, keepdims=True)


def _run_head(x_init, mean, std, gfold, b_emb, W1, b1, W2, b2, *, vmem_limit):
    f32 = jnp.float32
    n, g = x_init.shape
    n_classes = W2.shape[1]

    tm = min(256, _round_up(n, 8))          # amortize G' over more rows
    n_pad = _round_up(n, tm)
    tk = min(2048, _round_up(g, 128))       # >= ~1 MiB of x per pipeline step
    g_pad = _round_up(g, tk)
    cl_pad = _round_up(n_classes, 128)

    x_p = _pad2(x_init.astype(f32), n_pad, g_pad)
    mean_p = _pad2(mean.astype(f32), 1, g_pad)
    istd_p = _pad2((1.0 / std).astype(f32), 1, g_pad, value=1.0)
    gf_p = _pad2(gfold.astype(f32), g_pad, EPAD).astype(jnp.bfloat16)
    bemb_p = _pad2(b_emb.astype(f32), 1, EPAD)
    W1_p = _pad2(W1.astype(f32), EPAD, HPAD).astype(jnp.bfloat16)
    b1_p = _pad2(b1.astype(f32), 1, HPAD)
    W2_p = _pad2(W2.astype(f32), HPAD, cl_pad).astype(jnp.bfloat16)
    b2_p = _pad2(b2.astype(f32), 1, cl_pad)

    kernel = functools.partial(_embed_classify_kernel, n_classes=n_classes)

    emb_p, preds_p = pl.pallas_call(
        kernel,
        out_shape=(jax.ShapeDtypeStruct((n_pad, EPAD), f32),
                   jax.ShapeDtypeStruct((n_pad, cl_pad), f32)),
        grid_spec=pltpu.PrefetchScalarGridSpec(
            num_scalar_prefetch=0,
            grid=(n_pad // tm, g_pad // tk),
            in_specs=[
                pl.BlockSpec((tm, tk), lambda m, k: (m, k)),        # x
                pl.BlockSpec((1, tk), lambda m, k: (0, k)),         # mean
                pl.BlockSpec((1, tk), lambda m, k: (0, k)),         # inv_std
                pl.BlockSpec((tk, EPAD), lambda m, k: (k, 0)),      # G' = gm @ W_emb
                pl.BlockSpec((1, EPAD), lambda m, k: (0, 0)),       # b_emb (resident)
                pl.BlockSpec((EPAD, HPAD), lambda m, k: (0, 0)),    # W1 (resident)
                pl.BlockSpec((1, HPAD), lambda m, k: (0, 0)),       # b1
                pl.BlockSpec((HPAD, cl_pad), lambda m, k: (0, 0)),  # W2
                pl.BlockSpec((1, cl_pad), lambda m, k: (0, 0)),     # b2
            ],
            out_specs=(pl.BlockSpec((tm, EPAD), lambda m, k: (m, 0)),
                       pl.BlockSpec((tm, cl_pad), lambda m, k: (m, 0))),
            scratch_shapes=[pltpu.VMEM((tm, EPAD), f32)],
        ),
        compiler_params=pltpu.CompilerParams(
            dimension_semantics=("parallel", "arbitrary"),
            vmem_limit_bytes=vmem_limit),
    )(x_p, mean_p, istd_p, gf_p, bemb_p, W1_p, b1_p, W2_p, b2_p)

    return emb_p, preds_p[:n, :n_classes]


# --------------------------------------------------------------------------
# Kernel 2: fused pairwise-distance + k-smallest per A/B slab (no O(N^2) HBM)
# --------------------------------------------------------------------------
def _knn_kernel(all_ref, colsq_ref, out_ref, *,
                n_a_valid, n_a_cols, n_b_valid, n_b_cols, k_nn, tm):
    f32 = jnp.float32
    BIG = jnp.float32(1e30)

    # Query rows sliced from the resident bf16 slab (no duplicate input stream).
    row_start = pl.multiple_of(pl.program_id(0) * tm, tm)
    e_rows = all_ref[pl.ds(row_start, tm), :]                   # (tm, EPAD) bf16
    rows_f = e_rows.astype(f32)
    row_sq = jnp.sum(rows_f * rows_f, axis=1, keepdims=True)    # (tm, 1)

    def slab_knn(col_start, width, n_valid):
        # Distances against one lane-aligned column slab; squared distances
        # only — sqrt is deferred until after the k-selection.
        e_cols = all_ref[pl.ds(col_start, width), :]            # (width, EPAD) bf16
        gram = jax.lax.dot_general(
            e_rows, e_cols,
            dimension_numbers=(((1,), (1,)), ((), ())),
            preferred_element_type=f32)                         # (tm, width)
        csq = colsq_ref[:, pl.ds(col_start, width)]             # (1, width)
        d2 = jnp.maximum(row_sq + csq - 2.0 * gram, 0.0)

        col = jax.lax.broadcasted_iota(jnp.int32, d2.shape, 1)
        v = jnp.where(col < n_valid, d2, BIG)
        outs = []
        for _ in range(k_nn):                                   # k smallest, ascending
            mn = jnp.min(v, axis=1, keepdims=True)
            outs.append(mn)
            idx = jnp.min(jnp.where(v == mn, col, 2 ** 30), axis=1, keepdims=True)
            v = jnp.where(col == idx, BIG, v)
        return jnp.concatenate(outs, axis=1)                    # (tm, k_nn) squared

    selA = slab_knn(0, n_a_cols, n_a_valid)
    selB = slab_knn(n_a_cols, n_b_cols, n_b_valid)
    sel = jnp.concatenate([selA, selB], axis=1)                 # (tm, 2*k_nn)

    # sqrt on the selected values only; preserve the 1e30 sentinel post-sqrt.
    dist = jnp.where(sel >= 0.5 * BIG, BIG, jnp.sqrt(sel))
    pad = jnp.zeros((tm, 128 - 2 * k_nn), f32)
    out_ref[...] = jnp.concatenate([dist, pad], axis=1)         # lane-dense store


def _run_knn(emb_A, n_A, emb_B, n_B, k_nn, *, vmem_limit):
    f32 = jnp.float32
    assert 2 * k_nn <= 128
    nA_cols = _round_up(n_A, 128)
    nB_cols = _round_up(n_B, 128)
    n_tot_pad = nA_cols + nB_cols
    tm = 128

    A_p = _pad2(emb_A.astype(f32), nA_cols, EPAD)
    B_p = _pad2(emb_B.astype(f32), nB_cols, EPAD)
    all_bf = jnp.concatenate([A_p, B_p], axis=0).astype(jnp.bfloat16)
    all_f = all_bf.astype(f32)
    colsq = jnp.sum(all_f * all_f, axis=1)[None, :]             # (1, n_tot_pad)

    kernel = functools.partial(_knn_kernel, n_a_valid=n_A, n_a_cols=nA_cols,
                               n_b_valid=n_B, n_b_cols=nB_cols, k_nn=k_nn, tm=tm)

    packed = pl.pallas_call(
        kernel,
        out_shape=jax.ShapeDtypeStruct((n_tot_pad, 128), f32),
        grid_spec=pltpu.PrefetchScalarGridSpec(
            num_scalar_prefetch=0,
            grid=(n_tot_pad // tm,),
            in_specs=[
                pl.BlockSpec((n_tot_pad, EPAD), lambda m: (0, 0)),  # bf16 emb slab (resident)
                pl.BlockSpec((1, n_tot_pad), lambda m: (0, 0)),     # col |e|^2 (resident)
            ],
            out_specs=pl.BlockSpec((tm, 128), lambda m: (m, 0)),
        ),
        compiler_params=pltpu.CompilerParams(
            dimension_semantics=("parallel",),
            vmem_limit_bytes=vmem_limit),
    )(all_bf, colsq)

    dA = packed[:, :k_nn]
    dB = packed[:, k_nn:2 * k_nn]
    return dA, dB, nA_cols


# --------------------------------------------------------------------------
# Forward pass wrapper
# --------------------------------------------------------------------------
def tactics_forward(params, x_init_A, x_init_B, transfer=False):
    f32 = jnp.float32
    n_A = x_init_A.shape[0]
    n_B = x_init_B.shape[0]
    vmem_limit = _vmem_limit_bytes()

    # Fold the gene-space mapping into the embedding layer:
    # (x_norm @ gm) @ W_emb == x_norm @ (gm @ W_emb).
    gfold_A = jnp.dot(params["gm_A"].astype(f32), params["W_emb"].astype(f32))
    gfold_B = jnp.dot(params["gm_B"].astype(f32), params["W_emb"].astype(f32))

    if transfer:
        cA = (params["WB1"], params["bB1"], params["WB2"], params["bB2"])
        cB = (params["WA1"], params["bA1"], params["WA2"], params["bA2"])
    else:
        cA = (params["WA1"], params["bA1"], params["WA2"], params["bA2"])
        cB = (params["WB1"], params["bB1"], params["WB2"], params["bB2"])

    embA_p, preds_A = _run_head(x_init_A, params["mean_A"], params["std_A"],
                                gfold_A, params["b_emb"], *cA,
                                vmem_limit=vmem_limit)
    embB_p, preds_B = _run_head(x_init_B, params["mean_B"], params["std_B"],
                                gfold_B, params["b_emb"], *cB,
                                vmem_limit=vmem_limit)

    x_A = embA_p[:n_A, :LEN_EMB]
    x_B = embB_p[:n_B, :LEN_EMB]

    # Embedding loss: fused kNN kernel emits only 2*(k+1) neighbor distances
    # per row.  Reference quirk: n_B := len(x_A) inside embedding_loss_fn,
    # so the neighbor count depends on n_A only.
    dnn = min(DIST_N_NBRS, n_A - 1)
    k_nn = dnn + 1
    dA, dB, nA_cols = _run_knn(embA_p[:n_A], n_A, embB_p[:n_B], n_B, k_nn,
                               vmem_limit=vmem_limit)

    A_A = dA[:n_A, 1:dnn + 1].mean(axis=1)                 # skip self (smallest)
    A_B = dB[:n_A, 0:dnn].mean(axis=1)
    B_B = dB[nA_cols:nA_cols + n_B, 1:dnn + 1].mean(axis=1)
    B_A = dA[nA_cols:nA_cols + n_B, 0:dnn].mean(axis=1)
    fix = lambda v: jnp.where(v == 0, 1.0, v)
    loss = jnp.concatenate([fix(A_B) / fix(A_A), fix(B_A) / fix(B_B)], axis=0).mean()
    embedding_loss = jnp.maximum(loss, 0.0)

    return preds_A, preds_B, x_A, x_B, embedding_loss


# --------------------------------------------------------------------------
# Parameter construction (mirrors the reference __init__)
# --------------------------------------------------------------------------
def _normalize_gene_matches(gm):
    s = gm.sum(axis=1, keepdims=True)
    s = jnp.where(s == 0, 1.0, s)
    return gm / s


def init_params(key, n_genes_A, n_genes_B, n_classes_A, n_classes_B):
    n_common = n_genes_A + n_genes_B
    ks = jax.random.split(key, 14)
    f = jnp.float32

    def lin(k, fan_in, fan_out):
        kw, kb = jax.random.split(k)
        W = jax.random.normal(kw, (fan_in, fan_out), f) * (1.0 / jnp.sqrt(fan_in))
        b = jax.random.normal(kb, (1, fan_out), f) * 0.01
        return W, b

    gm_A = _normalize_gene_matches(
        jax.random.bernoulli(ks[0], 0.3, (n_genes_A, n_common)).astype(f))
    gm_B = _normalize_gene_matches(
        jax.random.bernoulli(ks[1], 0.3, (n_genes_B, n_common)).astype(f))

    mean_A = jax.random.normal(ks[2], (1, n_genes_A), f) * 0.1
    mean_B = jax.random.normal(ks[3], (1, n_genes_B), f) * 0.1
    std_A = jnp.abs(jax.random.normal(ks[4], (1, n_genes_A), f)) + 0.5
    std_B = jnp.abs(jax.random.normal(ks[5], (1, n_genes_B), f)) + 0.5

    W_emb, b_emb = lin(ks[6], n_common, LEN_EMB)
    WA1, bA1 = lin(ks[7], LEN_EMB, LEN_FINAL_EMB)
    WA2, bA2 = lin(ks[8], LEN_FINAL_EMB, n_classes_A)
    WB1, bB1 = lin(ks[9], LEN_EMB, LEN_FINAL_EMB)
    WB2, bB2 = lin(ks[10], LEN_FINAL_EMB, n_classes_B)

    return dict(gm_A=gm_A, gm_B=gm_B, mean_A=mean_A, mean_B=mean_B,
                std_A=std_A, std_B=std_B, W_emb=W_emb, b_emb=b_emb,
                WA1=WA1, bA1=bA1, WA2=WA2, bA2=bA2,
                WB1=WB1, bB1=bB1, WB2=WB2, bB2=bB2)


if __name__ == "__main__":
    N_A, N_B = 8, 8
    n_genes_A, n_genes_B = 16, 16
    n_classes_A, n_classes_B = 4, 6

    params = init_params(jax.random.PRNGKey(42),
                         n_genes_A, n_genes_B, n_classes_A, n_classes_B)

    key = jax.random.PRNGKey(0)
    kA, kB = jax.random.split(key)
    x_init_A = jnp.abs(jax.random.normal(kA, (N_A, n_genes_A), jnp.float32))
    x_init_B = jnp.abs(jax.random.normal(kB, (N_B, n_genes_B), jnp.float32))

    preds_A, preds_B, x_A, x_B, emb_loss = tactics_forward(
        params, x_init_A, x_init_B, transfer=False)
    jax.block_until_ready((preds_A, preds_B, x_A, x_B, emb_loss))

    assert preds_A.shape == (N_A, n_classes_A)
    assert preds_B.shape == (N_B, n_classes_B)
    assert x_A.shape == (N_A, LEN_EMB) and x_B.shape == (N_B, LEN_EMB)
    assert emb_loss.shape == ()
    assert bool(jnp.isfinite(emb_loss))
    assert bool(jnp.all(jnp.isfinite(preds_A))) and bool(jnp.all(jnp.isfinite(preds_B)))
    assert bool(jnp.all(jnp.abs(preds_A.sum(axis=1) - 1.0) < 1e-3))
    assert bool(jnp.all(jnp.abs(preds_B.sum(axis=1) - 1.0) < 1e-3))
    print("KERNEL_OK")
</pallas_src>

<mosaic_0001>
module attributes {stable_mosaic.version = 11 : i64} {
  func.func @_embed_classify_kernel(%arg0: i32, %arg1: i32, %arg2: memref<8x128xf32, #tpu.memory_space<vmem>>, %arg3: memref<1x128xf32, #tpu.memory_space<vmem>>, %arg4: memref<1x128xf32, #tpu.memory_space<vmem>>, %arg5: memref<128x128xbf16, #tpu.memory_space<vmem>>, %arg6: memref<1x128xf32, #tpu.memory_space<vmem>>, %arg7: memref<128x128xbf16, #tpu.memory_space<vmem>>, %arg8: memref<1x128xf32, #tpu.memory_space<vmem>>, %arg9: memref<128x128xbf16, #tpu.memory_space<vmem>>, %arg10: memref<1x128xf32, #tpu.memory_space<vmem>>, %arg11: memref<8x128xf32, #tpu.memory_space<vmem>>, %arg12: memref<8x128xf32, #tpu.memory_space<vmem>>, %arg13: memref<8x128xf32, #tpu.memory_space<vmem>>) attributes {dimension_semantics = [#tpu.dimension_semantics<parallel>, #tpu.dimension_semantics<arbitrary>], iteration_bounds = array<i64: 1, 1>, scalar_prefetch = 0 : i64, scratch_operands = 1 : i64, tpu.core_type = #tpu.core_type<tc>, window_params = [{transform_indices = @transform_0, window_bounds = array<i64: 8, 128>}, {transform_indices = @transform_1, window_bounds = array<i64: 1, 128>}, {transform_indices = @transform_2, window_bounds = array<i64: 1, 128>}, {transform_indices = @transform_3, window_bounds = array<i64: 128, 128>}, {pipeline_mode = #tpu.pipeline_mode<synchronous>, transform_indices = @transform_4, window_bounds = array<i64: 1, 128>}, {pipeline_mode = #tpu.pipeline_mode<synchronous>, transform_indices = @transform_5, window_bounds = array<i64: 128, 128>}, {pipeline_mode = #tpu.pipeline_mode<synchronous>, transform_indices = @transform_6, window_bounds = array<i64: 1, 128>}, {pipeline_mode = #tpu.pipeline_mode<synchronous>, transform_indices = @transform_7, window_bounds = array<i64: 128, 128>}, {pipeline_mode = #tpu.pipeline_mode<synchronous>, transform_indices = @transform_8, window_bounds = array<i64: 1, 128>}, {transform_indices = @transform_9, window_bounds = array<i64: 8, 128>}, {transform_indices = @transform_10, window_bounds = array<i64: 8, 128>}]} {
    %c0_i32 = arith.constant 0 : i32
    %0 = arith.cmpi eq, %arg1, %c0_i32 : i32
    %1 = arith.extui %0 : i1 to i32
    %c0_i32_0 = arith.constant 0 : i32
    %2 = arith.cmpi ne, %1, %c0_i32_0 : i32
    scf.if %2 {
      %cst_14 = arith.constant 0.000000e+00 : f32
      %19 = vector.broadcast %cst_14 : f32 to vector<8x128xf32>
      %c0_15 = arith.constant 0 : index
      %c0_16 = arith.constant 0 : index
      %20 = vector.load %arg13[%c0_15, %c0_16] : memref<8x128xf32, #tpu.memory_space<vmem>>, vector<8x128xf32>
      tpu.vector_store %arg13[%c0_15, %c0_16], %19 {strides = array<i32>} : memref<8x128xf32, #tpu.memory_space<vmem>>, vector<8x128xf32>,
    } else {
    }
    %c0 = arith.constant 0 : index
    %c0_1 = arith.constant 0 : index
    %3 = vector.load %arg2[%c0, %c0_1] : memref<8x128xf32, #tpu.memory_space<vmem>>, vector<8x128xf32>
    %c0_2 = arith.constant 0 : index
    %c0_3 = arith.constant 0 : index
    %4 = vector.load %arg3[%c0_2, %c0_3] : memref<1x128xf32, #tpu.memory_space<vmem>>, vector<1x128xf32>
    %5 = vector.broadcast %4 : vector<1x128xf32> to vector<8x128xf32>
    %6 = arith.subf %3, %5 : vector<8x128xf32>
    %c0_4 = arith.constant 0 : index
    %c0_5 = arith.constant 0 : index
    %7 = vector.load %arg4[%c0_4, %c0_5] : memref<1x128xf32, #tpu.memory_space<vmem>>, vector<1x128xf32>
    %8 = vector.broadcast %7 : vector<1x128xf32> to vector<8x128xf32>
    %9 = arith.mulf %6, %8 : vector<8x128xf32>
    %c0_6 = arith.constant 0 : index
    %c0_7 = arith.constant 0 : index
    %10 = vector.load %arg13[%c0_6, %c0_7] : memref<8x128xf32, #tpu.memory_space<vmem>>, vector<8x128xf32>
    %11 = arith.truncf %9 : vector<8x128xf32> to vector<8x128xbf16>
    %c0_8 = arith.constant 0 : index
    %c0_9 = arith.constant 0 : index
    %12 = vector.load %arg5[%c0_8, %c0_9] : memref<128x128xbf16, #tpu.memory_space<vmem>>, vector<128x128xbf16>
    %cst = arith.constant dense<0.000000e+00> : vector<8x128xf32>
    %13 = tpu.matmul %11, %12, %cst {dimension_numbers = #tpu.dot_dimension_numbers<[1], [0], [0], [1], [0, 0, 1, 1], [], []>} : vector<8x128xbf16>, vector<128x128xbf16>, vector<8x128xf32> -> vector<8x128xf32>
    %14 = arith.addf %10, %13 : vector<8x128xf32>
    %c0_10 = arith.constant 0 : index
    %c0_11 = arith.constant 0 : index
    %15 = vector.load %arg13[%c0_10, %c0_11] : memref<8x128xf32, #tpu.memory_space<vmem>>, vector<8x128xf32>
    tpu.vector_store %arg13[%c0_10, %c0_11], %14 {strides = array<i32>} : memref<8x128xf32, #tpu.memory_space<vmem>>, vector<8x128xf32>,
    %c0_i32_12 = arith.constant 0 : i32
    %16 = arith.cmpi eq, %arg1, %c0_i32_12 : i32
    %17 = arith.extui %16 : i1 to i32
    %c0_i32_13 = arith.constant 0 : i32
    %18 = arith.cmpi ne, %17, %c0_i32_13 : i32
    scf.if %18 {
      %c0_14 = arith.constant 0 : index
      %c0_15 = arith.constant 0 : index
      %19 = vector.load %arg13[%c0_14, %c0_15] : memref<8x128xf32, #tpu.memory_space<vmem>>, vector<8x128xf32>
      %c0_16 = arith.constant 0 : index
      %c0_17 = arith.constant 0 : index
      %20 = vector.load %arg6[%c0_16, %c0_17] : memref<1x128xf32, #tpu.memory_space<vmem>>, vector<1x128xf32>
      %21 = vector.broadcast %20 : vector<1x128xf32> to vector<8x128xf32>
      %22 = arith.addf %19, %21 : vector<8x128xf32>
      %cst_18 = arith.constant 0.000000e+00 : f32
      %23 = vector.broadcast %cst_18 : f32 to vector<8x128xf32>
      %24 = arith.maximumf %22, %23 : vector<8x128xf32>
      %c0_19 = arith.constant 0 : index
      %c0_20 = arith.constant 0 : index
      %25 = vector.load %arg11[%c0_19, %c0_20] : memref<8x128xf32, #tpu.memory_space<vmem>>, vector<8x128xf32>
      tpu.vector_store %arg11[%c0_19, %c0_20], %24 {strides = array<i32>} : memref<8x128xf32, #tpu.memory_space<vmem>>, vector<8x128xf32>,
      %26 = arith.truncf %24 : vector<8x128xf32> to vector<8x128xbf16>
      %c0_21 = arith.constant 0 : index
      %c0_22 = arith.constant 0 : index
      %27 = vector.load %arg7[%c0_21, %c0_22] : memref<128x128xbf16, #tpu.memory_space<vmem>>, vector<128x128xbf16>
      %cst_23 = arith.constant dense<0.000000e+00> : vector<8x128xf32>
      %28 = tpu.matmul %26, %27, %cst_23 {dimension_numbers = #tpu.dot_dimension_numbers<[1], [0], [0], [1], [0, 0, 1, 1], [], []>} : vector<8x128xbf16>, vector<128x128xbf16>, vector<8x128xf32> -> vector<8x128xf32>
      %c0_24 = arith.constant 0 : index
      %c0_25 = arith.constant 0 : index
      %29 = vector.load %arg8[%c0_24, %c0_25] : memref<1x128xf32, #tpu.memory_space<vmem>>, vector<1x128xf32>
      %30 = vector.broadcast %29 : vector<1x128xf32> to vector<8x128xf32>
      %31 = arith.addf %28, %30 : vector<8x128xf32>
      %cst_26 = arith.constant 0.000000e+00 : f32
      %32 = vector.broadcast %cst_26 : f32 to vector<8x128xf32>
      %33 = arith.maximumf %31, %32 : vector<8x128xf32>
      %34 = arith.truncf %33 : vector<8x128xf32> to vector<8x128xbf16>
      %c0_27 = arith.constant 0 : index
      %c0_28 = arith.constant 0 : index
      %35 = vector.load %arg9[%c0_27, %c0_28] : memref<128x128xbf16, #tpu.memory_space<vmem>>, vector<128x128xbf16>
      %cst_29 = arith.constant dense<0.000000e+00> : vector<8x128xf32>
      %36 = tpu.matmul %34, %35, %cst_29 {dimension_numbers = #tpu.dot_dimension_numbers<[1], [0], [0], [1], [0, 0, 1, 1], [], []>} : vector<8x128xbf16>, vector<128x128xbf16>, vector<8x128xf32> -> vector<8x128xf32>
      %c0_30 = arith.constant 0 : index
      %c0_31 = arith.constant 0 : index
      %37 = vector.load %arg10[%c0_30, %c0_31] : memref<1x128xf32, #tpu.memory_space<vmem>>, vector<1x128xf32>
      %38 = vector.broadcast %37 : vector<1x128xf32> to vector<8x128xf32>
      %39 = arith.addf %36, %38 : vector<8x128xf32>
      %40 = tpu.iota {dimensions = array<i32: 1>} : vector<8x128xi32>
      %c4_i32 = arith.constant 4 : i32
      %41 = vector.broadcast %c4_i32 : i32 to vector<8x128xi32>
      %42 = arith.cmpi slt, %40, %41 : vector<8x128xi32>
      %cst_32 = arith.constant -1.000000e+30 : f32
      %43 = vector.broadcast %cst_32 : f32 to vector<8x128xf32>
      %44 = arith.select %42, %39, %43 : vector<8x128xi1>, vector<8x128xf32>
      %cst_33 = arith.constant dense<0xFF800000> : vector<8xf32>
      %45 = vector.multi_reduction <maximumf>, %44, %cst_33 [1] : vector<8x128xf32> to vector<8xf32>
      %46 = vector.shape_cast %45 : vector<8xf32> to vector<8x1xf32>
      %47 = vector.broadcast %46 : vector<8x1xf32> to vector<8x128xf32>
      %48 = arith.subf %44, %47 : vector<8x128xf32>
      %49 = math.exp %48 : vector<8x128xf32>
      %cst_34 = arith.constant 0.000000e+00 : f32
      %50 = vector.broadcast %cst_34 : f32 to vector<8x128xf32>
      %51 = arith.select %42, %49, %50 : vector<8x128xi1>, vector<8x128xf32>
      %cst_35 = arith.constant dense<0.000000e+00> : vector<8xf32>
      %52 = vector.multi_reduction <add>, %51, %cst_35 [1] : vector<8x128xf32> to vector<8xf32>
      %53 = vector.shape_cast %52 : vector<8xf32> to vector<8x1xf32>
      %54 = vector.broadcast %53 : vector<8x1xf32> to vector<8x128xf32>
      %55 = arith.divf %51, %54 : vector<8x128xf32>
      %c0_36 = arith.constant 0 : index
      %c0_37 = arith.constant 0 : index
      %56 = vector.load %arg12[%c0_36, %c0_37] : memref<8x128xf32, #tpu.memory_space<vmem>>, vector<8x128xf32>
      tpu.vector_store %arg12[%c0_36, %c0_37], %55 {strides = array<i32>} : memref<8x128xf32, #tpu.memory_space<vmem>>, vector<8x128xf32>,
    } else {
    }
    return
  }
  func.func @transform_0(%arg0: i32, %arg1: i32) -> (i32, i32) {
    %c0_i32 = arith.constant 0 : i32
    return %arg0, %arg1 : i32, i32
  }
  func.func @transform_1(%arg0: i32, %arg1: i32) -> (i32, i32) {
    %c0_i32 = arith.constant 0 : i32
    %c0_i32_0 = arith.constant 0 : i32
    return %c0_i32, %arg1 : i32, i32
  }
  func.func @transform_2(%arg0: i32, %arg1: i32) -> (i32, i32) {
    %c0_i32 = arith.constant 0 : i32
    %c0_i32_0 = arith.constant 0 : i32
    return %c0_i32, %arg1 : i32, i32
  }
  func.func @transform_3(%arg0: i32, %arg1: i32) -> (i32, i32) {
    %c0_i32 = arith.constant 0 : i32
    %c0_i32_0 = arith.constant 0 : i32
    return %arg1, %c0_i32 : i32, i32
  }
  func.func @transform_4(%arg0: i32, %arg1: i32) -> (i32, i32) {
    %c0_i32 = arith.constant 0 : i32
    %c0_i32_0 = arith.constant 0 : i32
    %c0_i32_1 = arith.constant 0 : i32
    return %c0_i32, %c0_i32_0 : i32, i32
  }
  func.func @transform_5(%arg0: i32, %arg1: i32) -> (i32, i32) {
    %c0_i32 = arith.constant 0 : i32
    %c0_i32_0 = arith.constant 0 : i32
    %c0_i32_1 = arith.constant 0 : i32
    return %c0_i32, %c0_i32_0 : i32, i32
  }
  func.func @transform_6(%arg0: i32, %arg1: i32) -> (i32, i32) {
    %c0_i32 = arith.constant 0 : i32
    %c0_i32_0 = arith.constant 0 : i32
    %c0_i32_1 = arith.constant 0 : i32
    return %c0_i32, %c0_i32_0 : i32, i32
  }
  func.func @transform_7(%arg0: i32, %arg1: i32) -> (i32, i32) {
    %c0_i32 = arith.constant 0 : i32
    %c0_i32_0 = arith.constant 0 : i32
    %c0_i32_1 = arith.constant 0 : i32
    return %c0_i32, %c0_i32_0 : i32, i32
  }
  func.func @transform_8(%arg0: i32, %arg1: i32) -> (i32, i32) {
    %c0_i32 = arith.constant 0 : i32
    %c0_i32_0 = arith.constant 0 : i32
    %c0_i32_1 = arith.constant 0 : i32
    return %c0_i32, %c0_i32_0 : i32, i32
  }
  func.func @transform_9(%arg0: i32, %arg1: i32) -> (i32, i32) {
    %c0_i32 = arith.constant 0 : i32
    %c0_i32_0 = arith.constant 0 : i32
    return %arg0, %c0_i32 : i32, i32
  }
  func.func @transform_10(%arg0: i32, %arg1: i32) -> (i32, i32) {
    %c0_i32 = arith.constant 0 : i32
    %c0_i32_0 = arith.constant 0 : i32
    return %arg0, %c0_i32 : i32, i32
  }
}

</mosaic_0001>

<bundles_post_ra>
// kernel: tpu_custom_call.1
= control target key start
LH: loop header
LB: loop body
LE: loop exit
PB: predicated region body
PF: predicated region fallthrough
CT: control target
= control target key end

     0   :  { %16 = vsyncpa [#allocation4], 0  ;;  %s926_s0 = inlined_call_operand.hbm [shape: f32[8,128], index: 0, kind: input, shape index: {}]   ;;  %s927_s1 = inlined_call_operand.vmem [shape: f32[1,128], index: 1, kind: input, shape index: {}]   ;;  %s928_s2 = inlined_call_operand.vmem [shape: f32[1,128], index: 2, kind: input, shape index: {}]   ;;  %s929_s3 = inlined_call_operand.hbm [shape: bf16[128,128], index: 3, kind: input, shape index: {}]   ;;  %s930_s4 = inlined_call_operand.vmem [shape: f32[1,128], index: 4, kind: input, shape index: {}]   ;;  %s931_s5 = inlined_call_operand.hbm [shape: bf16[128,128], index: 5, kind: input, shape index: {}]   ;;  %s932_s6 = inlined_call_operand.vmem [shape: f32[1,128], index: 6, kind: input, shape index: {}]   ;;  %s933_s7 = inlined_call_operand.hbm [shape: bf16[128,128], index: 7, kind: input, shape index: {}]   ;;  %s934_s8 = inlined_call_operand.vmem [shape: f32[1,128], index: 8, kind: input, shape index: {}]   ;;  %s935_s9 = inlined_call_operand.hbm [shape: f32[8,128], index: 9, kind: output, shape index: {0}]   ;;  %s936_s10 = inlined_call_operand.hbm [shape: f32[8,128], index: 10, kind: output, shape index: {1}]  }
   0x1   :  { %17 = vsyncpa [#allocation7], 0 }
   0x2   :  { %18 = vsyncpa [#allocation10], 0 }
   0x3   :  { %19 = vsyncpa [#allocation5], 0 }
   0x4   :  { %20 = vsyncpa [#allocation13], 0  ;;  %s789_s13 = smov [#allocation6]  }
   0x5   :  { %s40_s14 = sshll.u32 %s789_s13, 4  ;;  %s41_s14 = int_to_ptr.vmem [resolvable:$true] %s40_s14 }
   0x6   :  { %s667_s15 = scalar_lea.vmem %s41_s14, 1024  ;;  %p672_p1 = scmp.lt.s32.totalorder %s41_s14, %s41_s14 }
   0x7   :  { %p668_p0 = scmp.ne.s32.totalorder %s41_s14, %s667_s15  ;;  %p673_p2 = scmp.lt.s32.totalorder %s667_s15, %s667_s15 }
   0x9   :  { %p674_p3 = por %p673_p2, %p672_p1 }
   0xb   :  { %p675_p4 = pnand %p674_p3, %p668_p0 }
   0xd   :  { %678 = shalt.err (!%p675_p4)
}
   0xe   :  { %s790_s16 = smov 64   ;;  %s791_s17 = smov 4  }
   0xf   :  { %46 = dma.hbm_to_vmem [thread:$0]  %s929_s3, 1024, %s41_s14, [#allocation7], %s790_s16, %s790_s16, %s791_s17  }
  0x10   :  { %s792_s20 = smov [#allocation3]   ;;  %s793_s22 = smov [#allocation8]  }
  0x11   :  { %s27_s21 = sshll.u32 %s792_s20, 4  ;;  %s54_s23 = sshll.u32 %s793_s22, 4  ;;  %s28_s21 = int_to_ptr.vmem [resolvable:$true] %s27_s21  ;;  %s55_s23 = int_to_ptr.vmem [resolvable:$true] %s54_s23 }
  0x12   :  { %s687_s24 = scalar_lea.vmem %s28_s21, 128  ;;  %p692_p6 = scmp.lt.s32.totalorder %s28_s21, %s28_s21 }
  0x13   :  { %p688_p5 = scmp.ne.s32.totalorder %s28_s21, %s687_s24  ;;  %p693_p7 = scmp.lt.s32.totalorder %s687_s24, %s687_s24 }
  0x15   :  { %p694_p8 = por %p693_p7, %p692_p6 }
  0x17   :  { %p695_p9 = pnand %p694_p8, %p688_p5 }
  0x19   :  { %698 = shalt.err (!%p695_p9)
}
  0x1a   :  { %30 = dma.hbm_to_vmem [thread:$0]  %s926_s0, 128, %s28_s21, [#allocation4]  }
  0x1b   :  { %s707_s27 = scalar_lea.vmem %s55_s23, 1024  ;;  %p712_p11 = scmp.lt.s32.totalorder %s55_s23, %s55_s23 }
  0x1c   :  { %p708_p10 = scmp.ne.s32.totalorder %s55_s23, %s707_s27  ;;  %p713_p12 = scmp.lt.s32.totalorder %s707_s27, %s707_s27 }
  0x1e   :  { %p714_p13 = por %p713_p12, %p712_p11 }
  0x20   :  { %p715_p0 = pnand %p714_p13, %p708_p10 }
  0x22   :  { %718 = shalt.err (!%p715_p0)
}
  0x23   :  { %60 = dma.hbm_to_vmem [thread:$0]  %s931_s5, 1024, %s55_s23, [#allocation7], %s790_s16, %s790_s16, %s791_s17  }
  0x24   :  { %s794_s29 = smov [#allocation9]  }
  0x25   :  { %s68_s30 = sshll.u32 %s794_s29, 4  ;;  %s69_s30 = int_to_ptr.vmem [resolvable:$true] %s68_s30 }
  0x26   :  { %s727_s11 = scalar_lea.vmem %s69_s30, 1024  ;;  %p732_p2 = scmp.lt.s32.totalorder %s69_s30, %s69_s30 }
  0x27   :  { %p728_p1 = scmp.ne.s32.totalorder %s69_s30, %s727_s11  ;;  %p733_p3 = scmp.lt.s32.totalorder %s727_s11, %s727_s11 }
  0x29   :  { %p734_p4 = por %p733_p3, %p732_p2 }
  0x2b   :  { %p735_p5 = pnand %p734_p4, %p728_p1 }
  0x2d   :  { %738 = shalt.err (!%p735_p5)
}
  0x2e   :  { %74 = dma.hbm_to_vmem [thread:$0]  %s933_s7, 1024, %s69_s30, [#allocation10], %s790_s16, %s790_s16, %s791_s17  }
  0x2f   :  { %779 = dma.done.wait [#allocation4], 128  }
  0x30   :  { %780 = vsyncadd [#allocation4], 4294967168 }
  0x31   :  { %781 = dma.done.wait [#allocation7], 2048  }
  0x32   :  { %782 = vsyncadd [#allocation7], 4294965248 }
  0x33   :  { %783 = dma.done.wait [#allocation10], 1024  }
  0x34   :  { %784 = vsyncadd [#allocation10], 4294966272  ;;  %v795_v0 = vmov 0.0   ;;  %vm796_vm0 = vmmov 0   ;;  %v631_v1 = vld [vmem:[#allocation6 + $0x38] sm:$0xff]   ;;  %v632_v2 = vld [vmem:[#allocation6 + $0x30] sm:$0xff]   ;;  %v459_v47 = vlaneseq }
  0x35   :  { %561 = vmatprep.subr.bf16.mxu0 %v795_v0  ;;  %577 = vmatprep.mubr.msk.bf16.mxu0 %vm796_vm0, %v795_v0  ;;  %v633_v3 = vld [vmem:[#allocation6 + $0x28] sm:$0xff]   ;;  %v639_v4 = vld [vmem:[#allocation8 + $0x38] sm:$0xff]   ;;  %v634_v5 = vld [vmem:[#allocation6 + $0x20] sm:$0xff]  }
  0x36   :  { %581 = vmatprep.subr.bf16.mxu1 %v795_v0  ;;  %597 = vmatprep.mubr.msk.bf16.mxu1 %vm796_vm0, %v795_v0  ;;  %v640_v6 = vld [vmem:[#allocation8 + $0x30] sm:$0xff]   ;;  %v635_v7 = vld [vmem:[#allocation6 + $0x18] sm:$0xff]   ;;  %v641_v8 = vld [vmem:[#allocation8 + $0x28] sm:$0xff]   ;;  %v460_v48 = vand.u32 127, %v459_v47 }
  0x37   :  { %562 = vmatpush3.bf16.msra.mxu0 %v631_v1  ;;  %582 = vmatpush3.bf16.msra.mxu1 %v639_v4  ;;  %v636_v9 = vld [vmem:[#allocation6 + $0x10] sm:$0xff]   ;;  %v95_v10 = vld [vmem:[#allocation3] sm:$0xff]  ;;  %v642_v12 = vld [vmem:[#allocation8 + $0x20] sm:$0xff]  }
  0x38   :  { %563 = vmatprep.subr.bf16.mxu0 %v795_v0  ;;  %583 = vmatprep.subr.bf16.mxu1 %v795_v0  ;;  %v505_v11 = vld [vmem:[%s927_s1] ss:$0 sm:$0xff]  ;;  %v637_v14 = vld [vmem:[#allocation6 + $0x8] sm:$0xff]   ;;  %v638_v18 = vld [vmem:[#allocation6] sm:$0xff]   ;;  %vm461_vm1 = vcmp.lt.s32.totalorder %v460_v48, 4 }
  0x39   :  { %v103_v13 = vsub.f32 %v95_v10, %v505_v11  ;;  %v506_v15 = vld [vmem:[%s928_s2] ss:$0 sm:$0xff]  ;;  %v644_v19 = vld [vmem:[#allocation8 + $0x10] sm:$0xff]   ;;  %v645_v21 = vld [vmem:[#allocation8 + $0x8] sm:$0xff]  }
  0x3a   :  { %v643_v16 = vld [vmem:[#allocation8 + $0x18] sm:$0xff]   ;;  %v646_v22 = vld [vmem:[#allocation8] sm:$0xff]   ;;  %v648_v24 = vld [vmem:[#allocation9 + $0x30] sm:$0xff]  }
  0x3b   :  { %564 = vmatpush3.bf16.msra.mxu0 %v632_v2  ;;  %584 = vmatpush3.bf16.msra.mxu1 %v640_v6  ;;  %v111_v17 = vmul.f32 %v506_v15, %v103_v13  ;;  %v647_v23 = vld [vmem:[#allocation9 + $0x38] sm:$0xff]   ;;  %v649_v25 = vld [vmem:[#allocation9 + $0x28] sm:$0xff]   ;;  %v650_v26 = vld [vmem:[#allocation9 + $0x20] sm:$0xff]  }
  0x3c   :  { %565 = vmatprep.subr.bf16.mxu0 %v795_v0  ;;  %585 = vmatprep.subr.bf16.mxu1 %v795_v0  ;;  %v651_v27 = vld [vmem:[#allocation9 + $0x18] sm:$0xff]   ;;  %v652_v28 = vld [vmem:[#allocation9 + $0x10] sm:$0xff]   ;;  %v653_v37 = vld [vmem:[#allocation9 + $0x8] sm:$0xff]  }
  0x3d   :  { %v113_v20 = vpack.c.bf16 %v111_v17, %v111_v17  ;;  %v515_v29 = vld [vmem:[%s930_s4] ss:$0 sm:$0xff]  ;;  %v654_v38 = vld [vmem:[#allocation9] sm:$0xff]  }
  0x3e   :  { %v516_v39 = vld [vmem:[%s932_s6] ss:$0 sm:$0xff]  ;;  %s797_s6 = smov [#allocation11]  }
  0x3f   :  { %566 = vmatpush3.bf16.msra.mxu0 %v633_v3  ;;  %586 = vmatpush3.bf16.msra.mxu1 %v641_v8  ;;  %v525_v49 = vld [vmem:[%s934_s8] ss:$0 sm:$0xff]  ;;  %s480_s18 = sshll.u32 %s797_s6, 4  ;;  %s481_s18 = int_to_ptr.vmem [resolvable:$true] %s480_s18 }
  0x40   :  { %567 = vmatprep.subr.bf16.mxu0 %v795_v0  ;;  %587 = vmatprep.subr.bf16.mxu1 %v795_v0  ;;  %s739_s19 = scalar_lea.vmem %s481_s18, 128  ;;  %p744_p7 = scmp.lt.s32.totalorder %s481_s18, %s481_s18 }
  0x41   :  { %p740_p6 = scmp.ne.s32.totalorder %s481_s18, %s739_s19  ;;  %p745_p8 = scmp.lt.s32.totalorder %s739_s19, %s739_s19 }
  0x43   :  { %568 = vmatpush3.bf16.msra.mxu0 %v634_v5  ;;  %588 = vmatpush3.bf16.msra.mxu1 %v642_v12  ;;  %p746_p9 = por %p745_p8, %p744_p7 }
  0x44   :  { %569 = vmatprep.subr.bf16.mxu0 %v795_v0  ;;  %589 = vmatprep.subr.bf16.mxu1 %v795_v0 }
  0x45   :  { %p747_p10 = pnand %p746_p9, %p740_p6 }
  0x47   :  { %570 = vmatpush3.bf16.msra.mxu0 %v635_v7  ;;  %590 = vmatpush3.bf16.msra.mxu1 %v643_v16 }
  0x48   :  { %571 = vmatprep.subr.bf16.mxu0 %v795_v0  ;;  %591 = vmatprep.subr.bf16.mxu1 %v795_v0 }
  0x4b   :  { %572 = vmatpush3.bf16.msra.mxu0 %v636_v9  ;;  %592 = vmatpush3.bf16.msra.mxu1 %v644_v19 }
  0x4c   :  { %573 = vmatprep.subr.bf16.mxu0 %v795_v0  ;;  %593 = vmatprep.subr.bf16.mxu1 %v795_v0 }
  0x4f   :  { %574 = vmatpush3.bf16.msra.mxu0 %v637_v14  ;;  %594 = vmatpush3.bf16.msra.mxu1 %v645_v21 }
  0x50   :  { %575 = vmatprep.subr.bf16.mxu0 %v795_v0  ;;  %595 = vmatprep.subr.bf16.mxu1 %v795_v0 }
  0x53   :  { %576 = vmatpush3.bf16.msra.mxu0 %v638_v18  ;;  %596 = vmatpush3.bf16.msra.mxu1 %v646_v22 }
  0x54   :  { %601 = vmatprep.subr.bf16.mxu0 %v795_v0 }
  0x56   :  { %578 = vmatmul.mubr.bf16.vlgmr.msra.gmra.mxu0 %v113_v20 }
  0x57   :  { %617 = vmatprep.mubr.msk.bf16.mxu0 %vm796_vm0, %v795_v0  ;;  %602 = vmatpush3.bf16.msra.mxu0 %v647_v23 }
  0x58   :  { %603 = vmatprep.subr.bf16.mxu0 %v795_v0 }
  0x5b   :  { %604 = vmatpush3.bf16.msra.mxu0 %v648_v24 }
  0x5c   :  { %605 = vmatprep.subr.bf16.mxu0 %v795_v0 }
  0x5f   :  { %606 = vmatpush3.bf16.msra.mxu0 %v649_v25 }
  0x60   :  { %607 = vmatprep.subr.bf16.mxu0 %v795_v0 }
  0x63   :  { %608 = vmatpush3.bf16.msra.mxu0 %v650_v26 }
  0x64   :  { %609 = vmatprep.subr.bf16.mxu0 %v795_v0 }
  0x67   :  { %610 = vmatpush3.bf16.msra.mxu0 %v651_v27 }
  0x68   :  { %611 = vmatprep.subr.bf16.mxu0 %v795_v0 }
  0x6b   :  { %612 = vmatpush3.bf16.msra.mxu0 %v652_v28 }
  0x6c   :  { %613 = vmatprep.subr.bf16.mxu0 %v795_v0 }
  0x6f   :  { %614 = vmatpush3.bf16.msra.mxu0 %v653_v37 }
  0x70   :  { %615 = vmatprep.subr.bf16.mxu0 %v795_v0 }
  0x73   :  { %616 = vmatpush3.bf16.msra.mxu0 %v654_v38 }
 0x116   :  { %v212_v30 = vpop.f32.mrf.mxu0 }
 0x117   :  { %v231_v31 = vadd.f32 %v515_v29, %v212_v30 }
 0x118   :  { %v579_v32 = vpop.f32.mrf.mxu0 }
 0x119   :  { %v232_v33 = vmax.f32 %v231_v31, 0.0 }
 0x11a   :  { %v215_v34 = vpop.f32.mrf.mxu0 }
 0x11b   :  { %v234_v35 = vpack.c.bf16 %v232_v33, %v232_v33  ;;  %233 = vst [vmem:[#allocation11] sm:$0xff] %v232_v33 }
 0x11c   :  { %v580_v36 = vpop.f32.mrf.mxu0 }
 0x11d   :  { %598 = vmatmul.mubr.bf16.vlgmr.msra.gmra.mxu1 %v234_v35 }
 0x1dd   :  { %v340_v40 = vpop.f32.mrf.mxu1 }
 0x1de   :  { %v341_v41 = vadd.f32 %v516_v39, %v340_v40 }
 0x1df   :  { %v599_v42 = vpop.f32.mrf.mxu1 }
 0x1e0   :  { %v346_v43 = vmax.f32 %v341_v41, 0.0 }
 0x1e1   :  { %v343_v44 = vpop.f32.mrf.mxu1 }
 0x1e2   :  { %v347_v45 = vpack.c.bf16 %v346_v43, %v346_v43 }
 0x1e3   :  { %v600_v46 = vpop.f32.mrf.mxu1 }
 0x1e4   :  { %618 = vmatmul.mubr.bf16.vlgmr.msra.gmra.mxu0 %v347_v45 }
 0x2a4   :  { %v453_v50 = vpop.f32.mrf.mxu0 }
 0x2a5   :  { %v454_v51 = vadd.f32 %v525_v49, %v453_v50 }
 0x2a6   :  { %v619_v52 = vpop.f32.mrf.mxu0 }
 0x2a7   :  { %v462_v53 = vsel %vm461_vm1, %v454_v51, -1e+30 }
 0x2a8   :  { %463 = vmax.xlane.f32.xlu0 %v462_v53  ;;  %v456_v54 = vpop.f32.mrf.mxu0 }
 0x2aa   :  { %v620_v55 = vpop.f32.mrf.mxu0 }
 0x331   :  { %v464_v56 = vpop.xlane.xlu0 %463 }
 0x332   :  { %v465_v57 = vsub.f32 %v462_v53, %v464_v56 }
 0x334   :  { %v466_v58 = vmul.f32 1.442695, %v465_v57 }
 0x336   :  { %655 = vpow2.f32 %v466_v58 }
 0x343   :  { %v656_v59 = vpop.eup %655 }
 0x344   :  { %v468_v60 = vsel %vm461_vm1, %v656_v59, 0.0 }
 0x345   :  { %469 = vadd.xlane.f32.xlu0 %v468_v60 }
 0x346   :  { %750 = shalt.err (!%p747_p10)
}
 0x347   :  { %483 = dma.vmem_to_hbm [thread:$0]  %s481_s18, 128, %s935_s9, [#allocation5]  }
 0x348   :  { %s798_s21 = smov [#allocation12]  }
 0x349   :  { %s490_s22 = sshll.u32 %s798_s21, 4  ;;  %s491_s22 = int_to_ptr.vmem [resolvable:$true] %s490_s22 }
 0x34a   :  { %s759_s23 = scalar_lea.vmem %s491_s22, 128  ;;  %p764_p12 = scmp.lt.s32.totalorder %s491_s22, %s491_s22 }
 0x34b   :  { %p760_p11 = scmp.ne.s32.totalorder %s491_s22, %s759_s23  ;;  %p765_p13 = scmp.lt.s32.totalorder %s759_s23, %s759_s23 }
 0x34d   :  { %p766_p0 = por %p765_p13, %p764_p12 }
 0x34f   :  { %p767_p1 = pnand %p766_p0, %p760_p11 }
 0x3ce   :  { %v470_v61 = vpop.xlane.xlu0 %469 }
 0x3cf   :  { %657 = vrcp.f32 %v470_v61 }
 0x3dc   :  { %v658_v62 = vpop.eup %657 }
 0x3dd   :  { %v472_v63 = vmul.f32 %v658_v62, %v468_v60 }
 0x3df   :  { %473 = vst [vmem:[#allocation12] sm:$0xff] %v472_v63 }
 0x3e0   :  { %770 = shalt.err (!%p767_p1)
}
 0x3e1   :  { %493 = dma.vmem_to_hbm [thread:$0]  %s491_s22, 128, %s936_s10, [#allocation13]  }
 0x3e2   :  { %785 = dma.done.wait [#allocation5], 128  }
 0x3e3   :  { %786 = vsyncadd [#allocation5], 4294967168 }
 0x3e4   :  { %787 = dma.done.wait [#allocation13], 128  }
 0x3e5   :  { %788 = vsyncadd [#allocation13], 4294967168 }
 0x3e6   :  { %500 = vsyncpa [#allocation4], 1 }
 0x3e7   :  { %501 = vsyncpa [#allocation7], 1 }
 0x3e8   :  { %502 = vsyncpa [#allocation10], 1 }
 0x3e9   :  { %503 = vsyncpa [#allocation5], 1 }
 0x3ea   :  { %504 = vsyncpa [#allocation13], 1 }

</bundles_post_ra>
